<compile_context>
chip_gen: v7x
topology: tpu7x:2x2x1
jax: 0.10.0
libtpu: 0.0.40
codegen_flags: <defaults>
</compile_context>

<pallas_src>
import jax
import jax.numpy as jnp
from jax import lax
from jax.experimental import pallas as pl
from jax.experimental.pallas import tpu as pltpu


_OFFSET = 100000.0  # same constant as the PyTorch module


def _round_up(x, m):
    return ((x + m - 1) // m) * m


def _cdiv(a, b):
    return (a + b - 1) // b


def _make_kernel(*, tr, tc, nct, acc_dtype, valid_in_last, ragged):
    """Build the DetLoss kernel closed over static tiling parameters."""
    q = tr // 128          # 128-wide chunks per (tr, tr) diagonal sub-block
    subs = tc // tr        # (tr, tr) sub-blocks per column tile
    n_chunks = tc // 128   # 128-wide chunks per column tile

    def kernel(dists_ref, diag_ref, w_ref, out_ref, min_acc):
        i = pl.program_id(0)            # row-tile index ("parallel")
        j = pl.program_id(1)            # column-tile index ("arbitrary")

        big = jnp.array(jnp.inf, dtype=acc_dtype)

        @pl.when(j == 0)
        def _init():
            min_acc[...] = jnp.full((tr, 128), jnp.inf, dtype=acc_dtype)

        # Which column tile holds this row tile's diagonal block, and which
        # (tr, tr) sub-block inside that tile it is (tr | tc guarantees the
        # diagonal block never straddles two column tiles).
        diag_j = i // subs
        sdiag = i % subs
        is_diag = j == diag_j

        def accum(diag_tile, ragged_tile):
            # Fold this tile's columns into the lane-wide running min, one
            # (tr, 128) chunk at a time (pure VPU work, no per-step XLU).
            acc = min_acc[...]
            if diag_tile:
                row_ids = lax.broadcasted_iota(jnp.int32, (tr, 128), 0)
                lane_ids = lax.broadcasted_iota(jnp.int32, (tr, 128), 1)
                # eqs[p][r, l] == True iff (r == p*128 + l): the diagonal
                # pattern of chunk position p inside a (tr, tr) sub-block.
                eqs = [row_ids == (p * 128 + lane_ids) for p in range(q)]
            for c in range(n_chunks):
                base = c * 128
                if ragged_tile and base >= valid_in_last:
                    continue                      # fully past the last column
                v = dists_ref[:, base:base + 128]
                if v.dtype != acc_dtype:
                    v = v.astype(acc_dtype)
                if diag_tile:
                    # Exclude diagonal elements; they are handled via
                    # diag_ref + OFFSET at finalize time.
                    m = jnp.logical_and(sdiag == (c // q), eqs[c % q])
                    v = jnp.where(m, big, v)
                if ragged_tile and base + 128 > valid_in_last:
                    lane = lax.broadcasted_iota(jnp.int32, (tr, 128), 1)
                    v = jnp.where(base + lane < valid_in_last, v, big)
                acc = jnp.minimum(acc, v)
            min_acc[...] = acc

        if nct == 1:
            # Single column tile: it always contains the diagonal block.
            accum(True, ragged)
        else:
            last = nct - 1
            if ragged:
                @pl.when(jnp.logical_and(is_diag, j == last))
                def _(): accum(True, True)

                @pl.when(jnp.logical_and(is_diag, j != last))
                def _(): accum(True, False)

                @pl.when(jnp.logical_and(jnp.logical_not(is_diag), j == last))
                def _(): accum(False, True)

                @pl.when(jnp.logical_and(jnp.logical_not(is_diag), j != last))
                def _(): accum(False, False)
            else:
                @pl.when(is_diag)
                def _(): accum(True, False)

                @pl.when(jnp.logical_not(is_diag))
                def _(): accum(False, False)

        @pl.when(j == nct - 1)
        def _finalize():
            # One cross-lane reduce per row tile (not per step).
            row_min = jnp.min(min_acc[...].astype(jnp.float32), axis=1,
                              keepdims=True)                       # (tr, 1)
            d_diag = diag_ref[...]                                 # (tr, 1) f32
            closest_negative = jnp.minimum(row_min, d_diag + _OFFSET)
            furthest_positive = jnp.maximum(d_diag, 0.0)           # exact for N>1
            out_ref[...] = (furthest_positive - closest_negative) * w_ref[...]

    return kernel


def det_loss(dists, anc_score, pos_score, *, row_tile=256,
             tile_bytes=4 * 1024 * 1024):
    """dists: (N, N), anc/pos_score: (N, 1) -> scalar f32 loss."""
    n = dists.shape[0]
    assert dists.shape == (n, n), "dists must be square (N, N)"

    w = (anc_score.reshape(n, 1).astype(jnp.float32)
         + pos_score.reshape(n, 1).astype(jnp.float32))            # (N, 1) f32
    # Diagonal extracted once in XLA: O(N) HBM traffic, keeps the kernel's
    # per-tile work to plain streaming mins.
    diag = jnp.diagonal(dists).astype(jnp.float32).reshape(n, 1)   # (N, 1) f32

    if n == 1:
        # Degenerate case (reference: max over the single masked element).
        d00 = diag[0, 0]
        return (d00 - (d00 + _OFFSET)) * w[0, 0]

    # Accumulate in the native dtype when it is order-exact under f32 upcast
    # (bf16/f32); anything else is cast to f32 chunk-by-chunk in-kernel.
    if dists.dtype == jnp.bfloat16 or dists.dtype == jnp.float32:
        acc_dtype = dists.dtype
    else:
        acc_dtype = jnp.float32

    if n < 128:
        # Tiny problem: padding to one aligned (128, 128) tile is free-ish and
        # avoids any partial-block handling.  +inf columns/rows are inert for
        # the min; padded diag/w rows are 0 so no NaN rows are produced.
        na = 128
        pad = na - n
        dists_arr = jnp.pad(dists.astype(acc_dtype), ((0, pad), (0, pad)),
                            constant_values=float("inf"))
        tr = tc = 128
        valid_cols = na
    else:
        na = n
        dists_arr = dists
        # Row tile: multiple of 128; keep >= 2 row tiles whenever possible so
        # the "parallel" axis can be split across TensorCores (v7x megacore).
        tr = max(128, (int(row_tile) // 128) * 128)
        tr = min(tr, _round_up(_cdiv(n, 2), 128))
        # Column tile: multiple of tr, sized so one dists tile is ~tile_bytes
        # (4 MiB -> 8 MiB double-buffered; fits every generation's default
        # scoped VMEM and keeps per-step DMA >> the ~0.35 us step overhead).
        itemsize = jnp.dtype(dists.dtype).itemsize
        tc = max(tr, (tile_bytes // (tr * itemsize)) // tr * tr)
        tc = min(tc, _round_up(n, tr))
        valid_cols = n

    nrt = _cdiv(na, tr)
    nct = _cdiv(na, tc)
    ragged = (valid_cols % tc) != 0
    valid_in_last = valid_cols - (nct - 1) * tc

    # Pad the tiny (N, 1) side inputs / output to whole row tiles (O(N) cost)
    # so only the big read-only dists blocks can ever be partial.
    mr = nrt * tr
    diag_arr = jnp.pad(diag, ((0, mr - n), (0, 0))) if mr != n else diag
    w_arr = jnp.pad(w, ((0, mr - n), (0, 0))) if mr != n else w

    kernel = _make_kernel(tr=tr, tc=tc, nct=nct, acc_dtype=acc_dtype,
                          valid_in_last=valid_in_last, ragged=ragged)

    itemsize = jnp.dtype(dists_arr.dtype).itemsize
    cost = pl.CostEstimate(flops=2 * na * na, transcendentals=0,
                           bytes_accessed=na * na * itemsize + 3 * mr * 4)

    out = pl.pallas_call(
        kernel,
        out_shape=jax.ShapeDtypeStruct((mr, 1), jnp.float32),
        grid_spec=pltpu.PrefetchScalarGridSpec(
            num_scalar_prefetch=0,
            grid=(nrt, nct),
            in_specs=[
                pl.BlockSpec((tr, tc), lambda i, j: (i, j)),   # streamed dists
                pl.BlockSpec((tr, 1), lambda i, j: (i, 0)),    # diag (resident)
                pl.BlockSpec((tr, 1), lambda i, j: (i, 0)),    # weights (resident)
            ],
            out_specs=pl.BlockSpec((tr, 1), lambda i, j: (i, 0)),
            scratch_shapes=[pltpu.VMEM((tr, 128), acc_dtype)],  # lane-wide min
        ),
        compiler_params=pltpu.CompilerParams(
            dimension_semantics=("parallel", "arbitrary")),
        cost_estimate=cost,
    )(dists_arr, diag_arr, w_arr)

    # Rows >= n (if any) are padding; slice before the mean.
    return jnp.mean(out[:n, 0])


def det_loss_ref(dists, anc_score, pos_score):
    """Pure-JAX reference mirroring the PyTorch forward."""
    n = dists.shape[0]
    d = dists.astype(jnp.float32)
    pids = jnp.arange(n)
    pos_mask = (pids[:, None] == pids[None, :]).astype(jnp.float32)
    furthest_positive = jnp.max(d * pos_mask, axis=1)
    closest_negative = jnp.min(d + _OFFSET * pos_mask, axis=1)
    w = (anc_score.astype(jnp.float32)
         + pos_score.astype(jnp.float32)).reshape(n)
    return jnp.mean((furthest_positive - closest_negative) * w)


if __name__ == "__main__":
    key = jax.random.PRNGKey(0)
    k1, k2, k3 = jax.random.split(key, 3)

    # Non-multiple-of-128 N exercises the in-kernel ragged-column masking and
    # gives 2 "parallel" row tiles (both TensorCores on v7x).
    N = 300
    dists = jax.random.uniform(k1, (N, N), dtype=jnp.float32) * 2.0
    anc_score = jax.random.uniform(k2, (N, 1), dtype=jnp.float32)
    pos_score = jax.random.uniform(k3, (N, 1), dtype=jnp.float32)

    out = jax.block_until_ready(det_loss(dists, anc_score, pos_score))
    ref = det_loss_ref(dists, anc_score, pos_score)
    assert jnp.allclose(out, ref, atol=1e-5, rtol=1e-5), (out, ref)

    # bf16 dists: streamed + reduced natively in bf16 (diag offset math in f32).
    N2 = 257
    d2 = (jax.random.uniform(k1, (N2, N2), dtype=jnp.float32) * 2.0).astype(
        jnp.bfloat16)
    a2 = jax.random.uniform(k2, (N2, 1), dtype=jnp.float32)
    p2 = jax.random.uniform(k3, (N2, 1), dtype=jnp.float32)
    out2 = jax.block_until_ready(det_loss(d2, a2, p2))
    ref2 = det_loss_ref(d2, a2, p2)
    assert jnp.allclose(out2, ref2, atol=1e-5, rtol=1e-5), (out2, ref2)

    # Tiny-N path (single padded 128x128 tile).
    N3 = 16
    d3 = jax.random.uniform(k1, (N3, N3), dtype=jnp.float32) * 2.0
    a3 = jax.random.uniform(k2, (N3, 1), dtype=jnp.float32)
    p3 = jax.random.uniform(k3, (N3, 1), dtype=jnp.float32)
    out3 = jax.block_until_ready(det_loss(d3, a3, p3))
    ref3 = det_loss_ref(d3, a3, p3)
    assert jnp.allclose(out3, ref3, atol=1e-5, rtol=1e-5), (out3, ref3)

    # N == 1 degenerate case (no kernel launch).
    d4 = jnp.ones((1, 1), jnp.float32)
    a4 = jnp.ones((1, 1), jnp.float32) * 0.5
    p4 = jnp.ones((1, 1), jnp.float32) * 0.25
    out4 = jax.block_until_ready(det_loss(d4, a4, p4))
    ref4 = det_loss_ref(d4, a4, p4)
    assert jnp.allclose(out4, ref4, atol=1e-5, rtol=1e-5), (out4, ref4)

    print("KERNEL_OK")
</pallas_src>

<mosaic_0001>
module attributes {stable_mosaic.version = 11 : i64} {
  func.func @kernel(%arg0: i32, %arg1: i32, %arg2: memref<256x512xf32, #tpu.memory_space<vmem>>, %arg3: memref<256x1xf32, #tpu.memory_space<vmem>>, %arg4: memref<256x1xf32, #tpu.memory_space<vmem>>, %arg5: memref<256x1xf32, #tpu.memory_space<vmem>>, %arg6: memref<256x128xf32, #tpu.memory_space<vmem>>) attributes {dimension_semantics = [#tpu.dimension_semantics<parallel>, #tpu.dimension_semantics<arbitrary>], iteration_bounds = array<i64: 2, 1>, scalar_prefetch = 0 : i64, scratch_operands = 1 : i64, tpu.core_type = #tpu.core_type<tc>, window_params = [{transform_indices = @transform_0, window_bounds = array<i64: 256, 512>}, {transform_indices = @transform_1, window_bounds = array<i64: 256, 1>}, {transform_indices = @transform_2, window_bounds = array<i64: 256, 1>}, {transform_indices = @transform_3, window_bounds = array<i64: 256, 1>}]} {
    %c0_i32 = arith.constant 0 : i32
    %0 = arith.cmpi eq, %arg1, %c0_i32 : i32
    %1 = arith.extui %0 : i1 to i32
    %c0_i32_0 = arith.constant 0 : i32
    %2 = arith.cmpi ne, %1, %c0_i32_0 : i32
    scf.if %2 {
      %cst_21 = arith.constant 0x7F800000 : f32
      %54 = vector.broadcast %cst_21 : f32 to vector<256x128xf32>
      %c0_22 = arith.constant 0 : index
      %c0_23 = arith.constant 0 : index
      %55 = vector.load %arg6[%c0_22, %c0_23] : memref<256x128xf32, #tpu.memory_space<vmem>>, vector<256x128xf32>
      tpu.vector_store %arg6[%c0_22, %c0_23], %54 {strides = array<i32>} : memref<256x128xf32, #tpu.memory_space<vmem>>, vector<256x128xf32>,
    } else {
    }
    %c2_i32 = arith.constant 2 : i32
    %c0_i32_1 = arith.constant 0 : i32
    %3 = arith.cmpi eq, %c2_i32, %c0_i32_1 : i32
    %c1_i32 = arith.constant 1 : i32
    %4 = arith.select %3, %c1_i32, %c2_i32 : i32
    %5 = arith.remsi %arg0, %4 : i32
    %c0_i32_2 = arith.constant 0 : i32
    %6 = arith.cmpi ne, %5, %c0_i32_2 : i32
    %c0_i32_3 = arith.constant 0 : i32
    %7 = arith.cmpi slt, %5, %c0_i32_3 : i32
    %c0_i32_4 = arith.constant 0 : i32
    %8 = arith.cmpi slt, %4, %c0_i32_4 : i32
    %9 = arith.xori %7, %8 : i1
    %10 = arith.andi %9, %6 : i1
    %11 = arith.addi %5, %4 : i32
    %12 = arith.select %10, %11, %5 : i32
    %c0 = arith.constant 0 : index
    %c0_5 = arith.constant 0 : index
    %13 = vector.load %arg6[%c0, %c0_5] : memref<256x128xf32, #tpu.memory_space<vmem>>, vector<256x128xf32>
    %14 = tpu.iota {dimensions = array<i32: 0>} : vector<256x128xi32>
    %15 = tpu.iota {dimensions = array<i32: 1>} : vector<256x128xi32>
    %c0_i32_6 = arith.constant 0 : i32
    %16 = vector.broadcast %c0_i32_6 : i32 to vector<256x128xi32>
    %17 = arith.addi %16, %15 : vector<256x128xi32>
    %18 = arith.cmpi eq, %14, %17 : vector<256x128xi32>
    %c128_i32 = arith.constant 128 : i32
    %19 = vector.broadcast %c128_i32 : i32 to vector<256x128xi32>
    %20 = arith.addi %19, %15 : vector<256x128xi32>
    %21 = arith.cmpi eq, %14, %20 : vector<256x128xi32>
    %c0_7 = arith.constant 0 : index
    %c0_8 = arith.constant 0 : index
    %22 = vector.load %arg2[%c0_7, %c0_8] : memref<256x512xf32, #tpu.memory_space<vmem>>, vector<256x128xf32>
    %c0_i32_9 = arith.constant 0 : i32
    %23 = arith.cmpi eq, %12, %c0_i32_9 : i32
    %24 = vector.broadcast %23 : i1 to vector<256x128xi1>
    %25 = arith.andi %24, %18 : vector<256x128xi1>
    %cst = arith.constant 0x7F800000 : f32
    %26 = vector.broadcast %cst : f32 to vector<256x128xf32>
    %27 = arith.select %25, %26, %22 : vector<256x128xi1>, vector<256x128xf32>
    %28 = arith.minimumf %13, %27 : vector<256x128xf32>
    %c0_10 = arith.constant 0 : index
    %c128 = arith.constant 128 : index
    %29 = vector.load %arg2[%c0_10, %c128] : memref<256x512xf32, #tpu.memory_space<vmem>>, vector<256x128xf32>
    %c0_i32_11 = arith.constant 0 : i32
    %30 = arith.cmpi eq, %12, %c0_i32_11 : i32
    %31 = vector.broadcast %30 : i1 to vector<256x128xi1>
    %32 = arith.andi %31, %21 : vector<256x128xi1>
    %cst_12 = arith.constant 0x7F800000 : f32
    %33 = vector.broadcast %cst_12 : f32 to vector<256x128xf32>
    %34 = arith.select %32, %33, %29 : vector<256x128xi1>, vector<256x128xf32>
    %35 = arith.minimumf %28, %34 : vector<256x128xf32>
    %c0_13 = arith.constant 0 : index
    %c256 = arith.constant 256 : index
    %36 = vector.load %arg2[%c0_13, %c256] : memref<256x512xf32, #tpu.memory_space<vmem>>, vector<256x128xf32>
    %c1_i32_14 = arith.constant 1 : i32
    %37 = arith.cmpi eq, %12, %c1_i32_14 : i32
    %38 = vector.broadcast %37 : i1 to vector<256x128xi1>
    %39 = arith.andi %38, %18 : vector<256x128xi1>
    %cst_15 = arith.constant 0x7F800000 : f32
    %40 = vector.broadcast %cst_15 : f32 to vector<256x128xf32>
    %41 = arith.select %39, %40, %36 : vector<256x128xi1>, vector<256x128xf32>
    %42 = tpu.iota {dimensions = array<i32: 1>} : vector<256x128xi32>
    %c256_i32 = arith.constant 256 : i32
    %43 = vector.broadcast %c256_i32 : i32 to vector<256x128xi32>
    %44 = arith.addi %43, %42 : vector<256x128xi32>
    %c300_i32 = arith.constant 300 : i32
    %45 = vector.broadcast %c300_i32 : i32 to vector<256x128xi32>
    %46 = arith.cmpi slt, %44, %45 : vector<256x128xi32>
    %cst_16 = arith.constant 0x7F800000 : f32
    %47 = vector.broadcast %cst_16 : f32 to vector<256x128xf32>
    %48 = arith.select %46, %41, %47 : vector<256x128xi1>, vector<256x128xf32>
    %49 = arith.minimumf %35, %48 : vector<256x128xf32>
    %c0_17 = arith.constant 0 : index
    %c0_18 = arith.constant 0 : index
    %50 = vector.load %arg6[%c0_17, %c0_18] : memref<256x128xf32, #tpu.memory_space<vmem>>, vector<256x128xf32>
    tpu.vector_store %arg6[%c0_17, %c0_18], %49 {strides = array<i32>} : memref<256x128xf32, #tpu.memory_space<vmem>>, vector<256x128xf32>,
    %c0_i32_19 = arith.constant 0 : i32
    %51 = arith.cmpi eq, %arg1, %c0_i32_19 : i32
    %52 = arith.extui %51 : i1 to i32
    %c0_i32_20 = arith.constant 0 : i32
    %53 = arith.cmpi ne, %52, %c0_i32_20 : i32
    scf.if %53 {
      %c0_21 = arith.constant 0 : index
      %c0_22 = arith.constant 0 : index
      %54 = vector.load %arg6[%c0_21, %c0_22] : memref<256x128xf32, #tpu.memory_space<vmem>>, vector<256x128xf32>
      %cst_23 = arith.constant dense<0x7F800000> : vector<256xf32>
      %55 = vector.multi_reduction <minimumf>, %54, %cst_23 [1] : vector<256x128xf32> to vector<256xf32>
      %56 = vector.shape_cast %55 : vector<256xf32> to vector<256x1xf32>
      %c0_24 = arith.constant 0 : index
      %c0_25 = arith.constant 0 : index
      %57 = vector.load %arg3[%c0_24, %c0_25] : memref<256x1xf32, #tpu.memory_space<vmem>>, vector<256x1xf32>
      %cst_26 = arith.constant 1.000000e+05 : f32
      %58 = vector.broadcast %cst_26 : f32 to vector<256x1xf32>
      %59 = arith.addf %57, %58 : vector<256x1xf32>
      %60 = arith.minimumf %56, %59 : vector<256x1xf32>
      %cst_27 = arith.constant 0.000000e+00 : f32
      %61 = vector.broadcast %cst_27 : f32 to vector<256x1xf32>
      %62 = arith.maximumf %57, %61 : vector<256x1xf32>
      %63 = arith.subf %62, %60 : vector<256x1xf32>
      %c0_28 = arith.constant 0 : index
      %c0_29 = arith.constant 0 : index
      %64 = vector.load %arg4[%c0_28, %c0_29] : memref<256x1xf32, #tpu.memory_space<vmem>>, vector<256x1xf32>
      %65 = arith.mulf %63, %64 : vector<256x1xf32>
      %c0_30 = arith.constant 0 : index
      %c0_31 = arith.constant 0 : index
      %66 = vector.load %arg5[%c0_30, %c0_31] : memref<256x1xf32, #tpu.memory_space<vmem>>, vector<256x1xf32>
      tpu.vector_store %arg5[%c0_30, %c0_31], %65 {strides = array<i32>} : memref<256x1xf32, #tpu.memory_space<vmem>>, vector<256x1xf32>,
    } else {
    }
    return
  }
  func.func @transform_0(%arg0: i32, %arg1: i32) -> (i32, i32) {
    %c0_i32 = arith.constant 0 : i32
    return %arg0, %arg1 : i32, i32
  }
  func.func @transform_1(%arg0: i32, %arg1: i32) -> (i32, i32) {
    %c0_i32 = arith.constant 0 : i32
    %c0_i32_0 = arith.constant 0 : i32
    return %arg0, %c0_i32 : i32, i32
  }
  func.func @transform_2(%arg0: i32, %arg1: i32) -> (i32, i32) {
    %c0_i32 = arith.constant 0 : i32
    %c0_i32_0 = arith.constant 0 : i32
    return %arg0, %c0_i32 : i32, i32
  }
  func.func @transform_3(%arg0: i32, %arg1: i32) -> (i32, i32) {
    %c0_i32 = arith.constant 0 : i32
    %c0_i32_0 = arith.constant 0 : i32
    return %arg0, %c0_i32 : i32, i32
  }
}

</mosaic_0001>

<bundles_post_ra>
// kernel: tpu_custom_call.1
= control target key start
LH: loop header
LB: loop body
LE: loop exit
PB: predicated region body
PF: predicated region fallthrough
CT: control target
= control target key end

     0   :  { %s2569_s12 = smov 0   ;;  %s2571_s13 = smov 0   ;;  %s3396_s0 = inlined_call_operand.vmem [shape: f32[300,300], index: 0, kind: input, shape index: {}]   ;;  %s3397_s1 = inlined_call_operand.vmem [shape: f32[512,1], index: 1, kind: input, shape index: {}]   ;;  %s3398_s2 = inlined_call_operand.vmem [shape: f32[512,1], index: 2, kind: input, shape index: {}]   ;;  %s3399_s3 = inlined_call_operand.vmem [shape: f32[512,1], index: 3, kind: output, shape index: {}]  }
   0x1   :  { %s2573_s14 = smov 0   ;;  %s2575_s15 = smov 0  }
   0x2   :  { %s2577_s16 = smov 0  }
   0x3 LB: > { %s25_s17 = sadd.s32 1, %s2523_s15  ;;  %p41_p1 = scmp.ne.s32.totalorder %s2515_s13, %s2511_s12  ;;  %s2527_s16 = sphi %s2577_s16, %s13_s16   ;;  %s2523_s15 = sphi %s2575_s15, %s3433_s15   ;;  %s2519_s14 = sphi %s2573_s14, %s3432_s14   ;;  %s2515_s13 = sphi %s2571_s13, %s3431_s13   ;;  %s2511_s12 = sphi %s2569_s12, %s3430_s12  }
   0x4   : > { %p27_p0 = scmp.ge.s32.totalorder %s25_s17, 2  ;;  %p42_p2 = scmp.eq.s32.totalorder %s2527_s16, 0 }
   0x5   : > { %s34_s19 = sadd.s32 1, %s2515_s13  ;;  %p2309_p5 = scmp.ge.s32.totalorder %s2527_s16, 2 }
   0x6   : > { %s3435_s17 = smov (%p27_p0, %s25_s17), 0  ;;  %p43_p3 = por %p42_p2, %p41_p1 }
   0x7   : > { %s29_s18 = ssub.s32 %s2523_s15, %s3435_s17  ;;  %145 = sbr.rel (%p2309_p5) target bundleno = 45 (0x2d), region = 16 }
   0x8   : > { %p32_p4 = scmp.eq.s32.totalorder %s29_s18, 0 }
   0xa   : > { %s2604_s20 = scalar_select %p32_p4, %s2515_s13, %s34_s19  }
   0xe   : > { %148 = sbr.rel (!%p43_p3) target bundleno = 45 (0x2d), region = 20  ;;  %s150_s21 = sand.u32 (%p43_p3), 1, %s2515_s13  }
   0xf   : > { %s2311_s22 = sshll.u32 (%p43_p3), %s2523_s15, 5  ;;  %s2609_s23 = sshll.u32 (%p43_p3), %s150_s21, 10 }
  0x10   : > { %s155_s24 = ssub.s32 (%p43_p3), 38, %s2311_s22  ;;  %s2387_s25 = smul.u32 (%p43_p3), 768, %s2523_s15 }
  0x11   : > { %p156_p6 = scmp.lt.s32.totalorder (%p43_p3), %s155_s24, 32  ;;  %s152_s30 = scalar_lea.vmem (%p43_p3), [#allocation3], %s2609_s23  }
  0x12   : > { %s2617_s28 = scalar_lea.vmem (%p43_p3), %s3396_s0, %s2387_s25  }
  0x15   : > { %s3437_s24 = smov (!%p156_p6, %s155_s24), 32 }
  0x16   : > { %s2313_s29 = smul.u32 384, %s3437_s24 }
  0x18   : > { %p2317_p7 = scmp.eq.s32.totalorder %s2313_s29, 0 }
  0x19   : > { %s501_s4 = smul.u32 (!%p2317_p7), 3, %s3437_s24  ;;  %s3400_s5 = smov (!%p2317_p7), %s152_s30 }
  0x1a   : > { %169 = sbr.rel (%p2317_p7) target bundleno = 45 (0x2d), region = 24  ;;  %s3401_s6 = smov (!%p2317_p7), %s2617_s28 }
  0x1b   : > { %s2629_s7 = smov (!%p2317_p7), 0   ;;  %s2631_s8 = smov (!%p2317_p7), 0  }
  0x1c   : > { %s2633_s9 = smov (!%p2317_p7), 0  }
  0x21 LB: >> { %v514_v0 = vld [vmem:[%s2535_s6] sm:$0xff]  ;;  %s516_s10 = sadd.s32 1, %s2539_s7  ;;  %s519_s11 = sadd.s32 1, %s2543_s8  ;;  %s2547_s9 = sphi %s2633_s9, %s507_s9   ;;  %s2543_s8 = sphi %s2631_s8, %s3403_s8   ;;  %s2539_s7 = sphi %s2629_s7, %s3402_s7   ;;  %s2535_s6 = sphi %s3401_s6, %s529_s6   ;;  %s2531_s5 = sphi %s3400_s5, %s530_s5  }
  0x22   : >> { %515 = vst [vmem:[%s2531_s5] sm:$0xff] %v514_v0  ;;  %p517_p8 = scmp.ge.s32.totalorder %s516_s10, 3  ;;  %s507_s9 = sadd.s32 1, %s2547_s9  }
  0x23   : >> { %p506_p10 = scmp.ge.s32.totalorder %s507_s9, %s501_s4 }
  0x24   : >> { %s3439_s10 = smov (%p517_p8, %s516_s10), 0  ;;  %s3441_s11 = smov (!%p517_p8, %s519_s11), %s2543_s8 }
  0x25   : >> { %p521_p9 = scmp.ge.s32.totalorder %s3441_s11, %s3437_s24  ;;  %s2328_s18 = sshll.u32 %s3439_s10, 3 }
  0x26   : >> { %s3402_s7 = smov %s3439_s10  ;;  %509 = sbr.rel (!%p506_p10) target bundleno = 33 (0x21), region = 227 }
  0x27   : >> { %s3443_s11 = smov (%p521_p9, %s3441_s11), 0 }
  0x28   : >> { %s523_s19 = smul.u32 24, %s3443_s11  ;;  %s2329_s21 = sshll.u32 %s3443_s11, 5 }
  0x29   : >> { %s528_s22 = sadd.s32 %s2329_s21, %s2328_s18  ;;  %s3403_s8 = smov %s3443_s11 }
  0x2a   : >> { %s525_s25 = sadd.s32 %s2328_s18, %s523_s19  ;;  %s530_s5 = scalar_lea.vmem %s152_s30, %s528_s22 [#allocation3]  }
  0x2b   : >> { %s529_s6 = scalar_lea.vmem %s2617_s28, %s525_s25  }
  0x2d PF: > { %p2370_p11 = scmp.ge.s32.totalorder %s2527_s16, 1  ;;  %p908_p12 = scmp.lt.s32.totalorder %s2527_s16, 3 }
  0x2f   : > { %p909_p13 = pnand %p2370_p11, %p908_p12 }
  0x30   : > { %p1010_p0 = scmp.lt.s32.totalorder (!%p909_p13), %s2519_s14, 0  ;;  %s1011_s26 = ssub.s32 (!%p909_p13), 0, %s2519_s14  ;;  %v1054_v1 = vlaneseq (!%p909_p13) }
  0x31   : > { %912 = sbr.rel (%p909_p13) target bundleno = 283 (0x11b), region = 122  ;;  %s2378_s27 = smin.u32 (!%p909_p13), %s2519_s14, %s1011_s26 }
  0x32   : > { %s1013_s29 = sand.u32 (!%p909_p13), 1, %s2378_s27   ;;  %s915_s9 = sand.u32 (!%p909_p13), 1, %s2511_s12   ;;  %v2662_v2 = vshrl.u32 (!%p909_p13), %v1054_v1, 7  ;;  %v2664_v3 = vand.u32 (!%p909_p13), 127, %v1054_v1 }
  0x33   : > { %s1014_s10 = ssub.s32 (!%p909_p13), 0, %s1013_s29  ;;  %s2371_s24 = sshll.u32 (!%p909_p13), %s915_s9, 10 }
  0x34   : > { %v1057_v4 = vadd.s32 (!%p909_p13), 16, %v2662_v2  ;;  %v2668_v5 = vadd.s32 (!%p909_p13), 256, %v2664_v3  ;;  %v1058_v6 = vadd.s32 (!%p909_p13), 24, %v2662_v2  ;;  %s2672_s30 = scalar_lea.vmem (!%p909_p13), [#allocation3], %s2371_s24  ;;  %vm1089_vm2 = vcmp.eq.s32.totalorder (!%p909_p13), %v2662_v2, %v2664_v3  ;;  %s2372_s4 = sshll.u32 (!%p909_p13), %s2519_s14, 5 }
  0x35   : > { %v1156_v7 = vld [vmem:[%s2672_s30 + $0x40] sm:$0xff] (!%p909_p13)  ;;  %v1288_v10 = vld [vmem:[%s2672_s30 + $0x48] sm:$0xff] (!%p909_p13)  ;;  %v1416_v11 = vld [vmem:[%s2672_s30 + $0x50] sm:$0xff] (!%p909_p13)  ;;  %v1056_v13 = vadd.s32 (!%p909_p13), 8, %v2662_v2  ;;  %v1060_v19 = vadd.s32 (!%p909_p13), 40, %v2662_v2  ;;  %v1059_v27 = vadd.s32 (!%p909_p13), 32, %v2662_v2 }
  0x36   : > { %vm1091_vm0 = vcmp.eq.s32.totalorder (!%p909_p13), %v1057_v4, %v2664_v3  ;;  %vm1515_vm5 = vcmp.lt.s32.totalorder (!%p909_p13), %v2668_v5, 300  ;;  %v1154_v15 = vld [vmem:[%s2672_s30] sm:$0xff] (!%p909_p13)  ;;  %v1286_v17 = vld [vmem:[%s2672_s30 + $0x8] sm:$0xff] (!%p909_p13)  ;;  %v1414_v18 = vld [vmem:[%s2672_s30 + $0x10] sm:$0xff] (!%p909_p13)  ;;  %vm1092_vm7 = vcmp.eq.s32.totalorder (!%p909_p13), %v1058_v6, %v2664_v3  ;;  %v1062_v36 = vadd.s32 (!%p909_p13), 56, %v2662_v2  ;;  %p957_p4 = scmp.lt.s32.totalorder (!%p909_p13), %s2372_s4, 63 }
  0x37   : > { %v1157_v22 = vld [vmem:[%s2672_s30 + $0x60] sm:$0xff] (!%p909_p13)  ;;  %v1289_v25 = vld [vmem:[%s2672_s30 + $0x68] sm:$0xff] (!%p909_p13)  ;;  %v1417_v26 = vld [vmem:[%s2672_s30 + $0x70] sm:$0xff] (!%p909_p13)  ;;  %vm1090_vm10 = vcmp.eq.s32.totalorder (!%p909_p13), %v1056_v13, %v2664_v3  ;;  %vm1094_vm13 = vcmp.eq.s32.totalorder (!%p909_p13), %v1060_v19, %v2664_v3  ;;  %v1061_v45 = vadd.s32 (!%p909_p13), 48, %v2662_v2  ;;  %v1064_v54 = vadd.s32 (!%p909_p13), 72, %v2662_v2 }
  0x38   : > { %s3445_s10 = smov (!%p1010_p0, %s1014_s10), %s1013_s29  ;;  %v1155_v31 = vld [vmem:[%s2672_s30 + $0x20] sm:$0xff]  ;;  %v1287_v34 = vld [vmem:[%s2672_s30 + $0x28] sm:$0xff]  ;;  %v1415_v35 = vld [vmem:[%s2672_s30 + $0x30] sm:$0xff]  ;;  %v1063_v59 = vadd.s32 64, %v2662_v2  ;;  %v2780_v0 = vadd.s32 88, %v2662_v2  ;;  %s3449_s4 = smov (!%p957_p4, %s2372_s4), 63 }
  0x39   : > { %p2380_p1 = scmp.lt.s32.totalorder %s3445_s10, 0  ;;  %s1020_s23 = sadd.s32 2, %s3445_s10  ;;  %v1159_v40 = vld [vmem:[%s2672_s30 + $0xa0] sm:$0xff]  ;;  %v1291_v43 = vld [vmem:[%s2672_s30 + $0xa8] sm:$0xff]  ;;  %v1419_v44 = vld [vmem:[%s2672_s30 + $0xb0] sm:$0xff] }
  0x3a   : > { %v1158_v49 = vld [vmem:[%s2672_s30 + $0x80] sm:$0xff]  ;;  %v1290_v52 = vld [vmem:[%s2672_s30 + $0x88] sm:$0xff]  ;;  %v1418_v53 = vld [vmem:[%s2672_s30 + $0x90] sm:$0xff]  ;;  %s2373_s5 = sshll.u32 %s3449_s4, 3 }
  0x3b   : > { %s3447_s23 = smov (!%p2380_p1, %s1020_s23), %s3445_s10  ;;  %v1161_v58 = vld [vmem:[%s2672_s30 + $0xe0] sm:$0xff]  ;;  %v1293_v62 = vld [vmem:[%s2672_s30 + $0xe8] sm:$0xff]  ;;  %v1421_v63 = vld [vmem:[%s2672_s30 + $0xf0] sm:$0xff]  ;;  %s3241_s8 = scalar_lea.vmem %s3397_s1, %s2373_s5 }
  0x3c   : > { %p1186_p2 = scmp.eq.s32.totalorder %s3447_s23, 0  ;;  %p1446_p3 = scmp.eq.s32.totalorder %s3447_s23, 1  ;;  %v1420_v13 = vld [vmem:[%s2672_s30 + $0xd0] sm:$0xff]  ;;  %v1163_v19 = vld [vmem:[%s2672_s30 + $0x120] sm:$0xff] }
  0x3d   : > { %v1433_v14 = vld [vmem:[%s2672_s30 + $0x270] sm:$0xff]  ;;  %s3249_s14 = scalar_lea.vmem %s3398_s2, %s2373_s5  ;;  %s3257_s22 = scalar_lea.vmem %s3399_s3, %s2373_s5 }
  0x3e   : > { %s1187_s28 = scalar_select %p1186_p2, 1, 0  ;;  %v1713_v5 = vld [vmem:[%s3241_s8 + $0x10] sm:$0xff] }
  0x3f   : > { %s1447_s12 = scalar_select %p1446_p3, 1, 0 }
  0x40   : > { %v1188_v8 = vstv %s1187_s28 }
  0x41   : > { %vm2675_vm1 = vcmp.eq.s32.totalorder %v1188_v8, 1  ;;  %v1448_v12 = vstv %s1447_s12  ;;  %v2788_v8 = vadd.s32 80, %v2662_v2 }
  0x42   : > { %vm1192_vm3 = vmand %vm2675_vm1, %vm1091_vm0  ;;  %vm2688_vm4 = vcmp.eq.s32.totalorder %v1448_v12, 1  ;;  %v1292_v12 = vld [vmem:[%s2672_s30 + $0xc8] sm:$0xff] }
  0x43   : > { %v1224_v16 = vsel %vm1192_vm3, inf, %v1156_v7  ;;  %vm1452_vm6 = vmand %vm2688_vm4, %vm1091_vm0  ;;  %vm1093_vm0 = vcmp.eq.s32.totalorder %v1059_v27, %v2664_v3  ;;  %v1160_v7 = vld [vmem:[%s2672_s30 + $0xc0] sm:$0xff] }
  0x44   : > { %v1384_v20 = vmin.f32 %v1224_v16, %v1288_v10  ;;  %v1484_v21 = vsel %vm1452_vm6, inf, %v1416_v11  ;;  %vm1190_vm8 = vmand %vm2675_vm1, %vm1089_vm2  ;;  %vm1096_vm6 = vcmp.eq.s32.totalorder %v1062_v36, %v2664_v3 }
  0x45   : > { %v1518_v23 = vsel %vm1515_vm5, %v1484_v21, inf  ;;  %v1222_v24 = vsel %vm1190_vm8, inf, %v1154_v15  ;;  %vm1450_vm9 = vmand %vm2688_vm4, %vm1089_vm2  ;;  %v2800_v15 = vadd.s32 104, %v2662_v2 }
  0x46   : > { %v1550_v28 = vmin.f32 %v1384_v20, %v1518_v23  ;;  %v1382_v29 = vmin.f32 %v1222_v24, %v1286_v17  ;;  %v1482_v30 = vsel %vm1450_vm9, inf, %v1414_v18  ;;  %vm1193_vm11 = vmand %vm2675_vm1, %vm1092_vm7  ;;  %vm1095_vm9 = vcmp.eq.s32.totalorder %v1061_v45, %v2664_v3  ;;  %v1423_v23 = vld [vmem:[%s2672_s30 + $0x130] sm:$0xff] }
  0x47   : > { %v1516_v32 = vsel %vm1515_vm5, %v1482_v30, inf  ;;  %v1225_v33 = vsel %vm1193_vm11, inf, %v1157_v22  ;;  %vm1453_vm12 = vmand %vm2688_vm4, %vm1092_vm7  ;;  %v1295_v22 = vld [vmem:[%s2672_s30 + $0x128] sm:$0xff]  ;;  %v2817_v24 = vadd.s32 96, %v2662_v2 }
  0x48   : > { %1651 = vmin.xlane.f32.xlu1 %v1550_v28  ;;  %v1548_v37 = vmin.f32 %v1382_v29, %v1516_v32  ;;  %v1385_v38 = vmin.f32 %v1225_v33, %v1289_v25  ;;  %v1485_v39 = vsel %vm1453_vm12, inf, %v1417_v26  ;;  %vm1191_vm14 = vmand %vm2675_vm1, %vm1090_vm10  ;;  %vm1098_vm12 = vcmp.eq.s32.totalorder %v1064_v54, %v2664_v3  ;;  %v1162_v29 = vld [vmem:[%s2672_s30 + $0x100] sm:$0xff]  ;;  %v1294_v32 = vld [vmem:[%s2672_s30 + $0x108] sm:$0xff] }
  0x49   : > { %v1519_v41 = vsel %vm1515_vm5, %v1485_v39, inf  ;;  %v1223_v42 = vsel %vm1191_vm14, inf, %v1155_v31  ;;  %vm1451_vm15 = vmand %vm2688_vm4, %vm1090_vm10  ;;  %vm1097_vm14 = vcmp.eq.s32.totalorder %v1063_v59, %v2664_v3  ;;  %v2820_v25 = vadd.s32 120, %v2662_v2  ;;  %v1422_v33 = vld [vmem:[%s2672_s30 + $0x110] sm:$0xff] }
  0x4a   : > { %1647 = vmin.xlane.f32.xlu0 %v1548_v37  ;;  %v1551_v46 = vmin.f32 %v1385_v38, %v1519_v41  ;;  %v1383_v47 = vmin.f32 %v1223_v42, %v1287_v34  ;;  %v1483_v48 = vsel %vm1451_vm15, inf, %v1415_v35  ;;  %vm1195_vm2 = vmand %vm2675_vm1, %vm1094_vm13  ;;  %v1165_v37 = vld [vmem:[%s2672_s30 + $0x160] sm:$0xff]  ;;  %v2847_v38 = vadd.s32 112, %v2662_v2  ;;  %v1297_v41 = vld [vmem:[%s2672_s30 + $0x168] sm:$0xff] }
  0x4b   : > { %v1517_v50 = vsel %vm1515_vm5, %v1483_v48, inf  ;;  %v1227_v51 = vsel %vm1195_vm2, inf, %v1159_v40  ;;  %vm1455_vm3 = vmand %vm2688_vm4, %vm1094_vm13  ;;  %vm1100_vm2 = vcmp.eq.s32.totalorder %v2780_v0, %v2664_v3  ;;  %v1425_v42 = vld [vmem:[%s2672_s30 + $0x170] sm:$0xff]  ;;  %v1164_v48 = vld [vmem:[%s2672_s30 + $0x140] sm:$0xff] }
  0x4c   : > { %1653 = vmin.xlane.f32.xlu1 %v1551_v46  ;;  %v1549_v55 = vmin.f32 %v1383_v47, %v1517_v50  ;;  %v1387_v56 = vmin.f32 %v1227_v51, %v1291_v43  ;;  %v1487_v57 = vsel %vm1455_vm3, inf, %v1419_v44  ;;  %vm1194_vm7 = vmand %vm2675_vm1, %vm1093_vm0  ;;  %v2858_v43 = vadd.s32 136, %v2662_v2  ;;  %v1296_v51 = vld [vmem:[%s2672_s30 + $0x148] sm:$0xff] }
  0x4d   : > { %v1521_v60 = vsel %vm1515_vm5, %v1487_v57, inf  ;;  %v1226_v61 = vsel %vm1194_vm7, inf, %v1158_v49  ;;  %vm1454_vm8 = vmand %vm2688_vm4, %vm1093_vm0  ;;  %vm1102_vm7 = vcmp.eq.s32.totalorder %v2800_v15, %v2664_v3  ;;  %v2861_v44 = vadd.s32 128, %v2664_v3  ;;  %v1167_v57 = vld [vmem:[%s2672_s30 + $0x1a0] sm:$0xff] }
  0x4e   : > { %1649 = vmin.xlane.f32.xlu0 %v1549_v55  ;;  %v1553_v1 = vmin.f32 %v1387_v56, %v1521_v60  ;;  %v1386_v4 = vmin.f32 %v1226_v61, %v1290_v52  ;;  %v1486_v6 = vsel %vm1454_vm8, inf, %v1418_v53  ;;  %vm1197_vm10 = vmand %vm2675_vm1, %vm1096_vm6  ;;  %v1424_v52 = vld [vmem:[%s2672_s30 + $0x150] sm:$0xff]  ;;  %v2883_v53 = vadd.s32 128, %v2662_v2  ;;  %v1299_v60 = vld [vmem:[%s2672_s30 + $0x1a8] sm:$0xff] }
  0x4f   : > { %v1520_v10 = vsel %vm1515_vm5, %v1486_v6, inf  ;;  %v1229_v11 = vsel %vm1197_vm10, inf, %v1161_v58  ;;  %vm1457_vm11 = vmand %vm2688_vm4, %vm1096_vm6  ;;  %vm1099_vm6 = vcmp.eq.s32.totalorder %v2788_v8, %v2664_v3  ;;  %v1427_v61 = vld [vmem:[%s2672_s30 + $0x1b0] sm:$0xff]  ;;  %v2914_v6 = vadd.s32 144, %v2662_v2  ;;  %v1169_v15 = vld [vmem:[%s2672_s30 + $0x1e0] sm:$0xff] }
  0x50   : > { %1657 = vmin.xlane.f32.xlu1 %v1553_v1  ;;  %v1552_v16 = vmin.f32 %v1386_v4, %v1520_v10  ;;  %v1389_v17 = vmin.f32 %v1229_v11, %v1293_v62  ;;  %v1489_v18 = vsel %vm1457_vm11, inf, %v1421_v63  ;;  %vm1196_vm13 = vmand %vm2675_vm1, %vm1095_vm9  ;;  %vm1101_vm11 = vcmp.eq.s32.totalorder %v2817_v24, %v2664_v3  ;;  %v1166_v4 = vld [vmem:[%s2672_s30 + $0x180] sm:$0xff]  ;;  %v1298_v10 = vld [vmem:[%s2672_s30 + $0x188] sm:$0xff] }
  0x51   : > { %v1523_v20 = vsel %vm1515_vm5, %v1489_v18, inf  ;;  %v1228_v21 = vsel %vm1196_vm13, inf, %v1160_v7  ;;  %vm1456_vm15 = vmand %vm2688_vm4, %vm1095_vm9  ;;  %vm1104_vm13 = vcmp.eq.s32.totalorder %v2820_v25, %v2664_v3  ;;  %v2905_v62 = vadd.s32 152, %v2662_v2  ;;  %v1426_v11 = vld [vmem:[%s2672_s30 + $0x190] sm:$0xff]  ;;  %v1301_v18 = vld [vmem:[%s2672_s30 + $0x1e8] sm:$0xff] }
  0x52   : > { %1655 = vmin.xlane.f32.xlu0 %v1552_v16  ;;  %v1555_v26 = vmin.f32 %v1389_v17, %v1523_v20  ;;  %v1388_v27 = vmin.f32 %v1228_v21, %v1292_v12  ;;  %v1488_v28 = vsel %vm1456_vm15, inf, %v1420_v13  ;;  %vm1199_vm0 = vmand %vm2675_vm1, %vm1098_vm12  ;;  %vm1103_vm15 = vcmp.eq.s32.totalorder %v2847_v38, %v2664_v3  ;;  %v1300_v24 = vld [vmem:[%s2672_s30 + $0x1c8] sm:$0xff]  ;;  %v1170_v25 = vld [vmem:[%s2672_s30 + $0x200] sm:$0xff] }
  0x53   : > { %v1522_v30 = vsel %vm1515_vm5, %v1488_v28, inf  ;;  %v1231_v31 = vsel %vm1199_vm0, inf, %v1163_v19  ;;  %vm1459_vm3 = vmand %vm2688_vm4, %vm1098_vm12  ;;  %v2928_v12 = vadd.s32 168, %v2662_v2  ;;  %v2938_v19 = vadd.s32 160, %v2662_v2  ;;  %v1305_v3 = vld [vmem:[%s2672_s30 + $0x268] sm:$0xff] }
  0x54   : > { %1661 = vmin.xlane.f32.xlu1 %v1555_v26  ;;  %v1554_v34 = vmin.f32 %v1388_v27, %v1522_v30  ;;  %v1391_v35 = vmin.f32 %v1231_v31, %v1295_v22  ;;  %v1491_v36 = vsel %vm1459_vm3, inf, %v1423_v23  ;;  %vm1198_vm8 = vmand %vm2675_vm1, %vm1097_vm14  ;;  %v1429_v22 = vld [vmem:[%s2672_s30 + $0x1f0] sm:$0xff]  ;;  %v1168_v23 = vld [vmem:[%s2672_s30 + $0x1c0] sm:$0xff]  ;;  %v2952_v26 = vadd.s32 184, %v2662_v2 }
  0x55   : > { %v1525_v39 = vsel %vm1515_vm5, %v1491_v36, inf  ;;  %v1230_v40 = vsel %vm1198_vm8, inf, %v1162_v29  ;;  %vm1458_vm9 = vmand %vm2688_vm4, %vm1097_vm14  ;;  %vm1138_vm8 = vcmp.eq.s32.totalorder %v2883_v53, %v2861_v44  ;;  %v1428_v30 = vld [vmem:[%s2672_s30 + $0x1d0] sm:$0xff]  ;;  %v2976_v36 = vadd.s32 176, %v2662_v2 }
  0x56   : > { %1659 = vmin.xlane.f32.xlu0 %v1554_v34  ;;  %v1557_v45 = vmin.f32 %v1391_v35, %v1525_v39  ;;  %v1390_v46 = vmin.f32 %v1230_v40, %v1294_v32  ;;  %v1490_v47 = vsel %vm1458_vm9, inf, %v1422_v33  ;;  %vm1201_vm10 = vmand %vm2675_vm1, %vm1100_vm2  ;;  %v1171_v33 = vld [vmem:[%s2672_s30 + $0x220] sm:$0xff]  ;;  %v1303_v34 = vld [vmem:[%s2672_s30 + $0x228] sm:$0xff]  ;;  %v3009_v38 = vadd.s32 192, %v2662_v2 }
  0x57   : > { %v1524_v49 = vsel %vm1515_vm5, %v1490_v47, inf  ;;  %v1233_v50 = vsel %vm1201_vm10, inf, %v1165_v37  ;;  %vm1461_vm12 = vmand %vm2688_vm4, %vm1100_vm2  ;;  %vm1139_vm2 = vcmp.eq.s32.totalorder %v2858_v43, %v2861_v44  ;;  %vm1141_vm10 = vcmp.eq.s32.totalorder %v2905_v62, %v2861_v44  ;;  %v1431_v35 = vld [vmem:[%s2672_s30 + $0x230] sm:$0xff]  ;;  %v1173_v47 = vld [vmem:[%s2672_s30 + $0x260] sm:$0xff] }
  0x58   : > { %1665 = vmin.xlane.f32.xlu1 %v1557_v45  ;;  %v1556_v54 = vmin.f32 %v1390_v46, %v1524_v49  ;;  %v1393_v55 = vmin.f32 %v1233_v50, %v1297_v41  ;;  %v1493_v56 = vsel %vm1461_vm12, inf, %v1425_v42  ;;  %vm1200_vm14 = vmand %vm2675_vm1, %vm1099_vm6  ;;  %vm1140_vm12 = vcmp.eq.s32.totalorder %v2914_v6, %v2861_v44  ;;  %v1302_v41 = vld [vmem:[%s2672_s30 + $0x208] sm:$0xff]  ;;  %v1430_v46 = vld [vmem:[%s2672_s30 + $0x210] sm:$0xff] }
  0x59   : > { %v1527_v58 = vsel %vm1515_vm5, %v1493_v56, inf  ;;  %v1232_v59 = vsel %vm1200_vm14, inf, %v1164_v48  ;;  %vm1460_vm0 = vmand %vm2688_vm4, %vm1099_vm6  ;;  %v2999_v48 = vadd.s32 200, %v2662_v2  ;;  %v1172_v43 = vld [vmem:[%s2672_s30 + $0x240] sm:$0xff]  ;;  %v1304_v56 = vld [vmem:[%s2672_s30 + $0x248] sm:$0xff] }
  0x5a   : > { %1663 = vmin.xlane.f32.xlu0 %v1556_v54  ;;  %v1559_v63 = vmin.f32 %v1393_v55, %v1527_v58  ;;  %v1392_v0 = vmin.f32 %v1232_v59, %v1296_v51  ;;  %v1492_v1 = vsel %vm1460_vm0, inf, %v1424_v52  ;;  %vm1203_vm3 = vmand %vm2675_vm1, %vm1102_vm7  ;;  %vm1143_vm0 = vcmp.eq.s32.totalorder %v2928_v12, %v2861_v44  ;;  %v1432_v53 = vld [vmem:[%s2672_s30 + $0x250] sm:$0xff]  ;;  %v1175_v62 = vld [vmem:[%s2672_s30 + $0x2a0] sm:$0xff] }
  0x5b   : > { %v1526_v7 = vsel %vm1515_vm5, %v1492_v1, inf  ;;  %v1235_v8 = vsel %vm1203_vm3, inf, %v1167_v57  ;;  %vm1463_vm6 = vmand %vm2688_vm4, %vm1102_vm7  ;;  %vm1142_vm3 = vcmp.eq.s32.totalorder %v2938_v19, %v2861_v44  ;;  %v1533_v55 = vsel %vm1515_vm5, %v1431_v35, inf  ;;  %v1435_v6 = vld [vmem:[%s2672_s30 + $0x2b0] sm:$0xff]  ;;  %v1311_v35 = vld [vmem:[%s2672_s30 + $0x328] sm:$0xff] }
  0x5c   : > { %1669 = vmin.xlane.f32.xlu1 %v1559_v63  ;;  %v1558_v13 = vmin.f32 %v1392_v0, %v1526_v7  ;;  %v1395_v16 = vmin.f32 %v1235_v8, %v1299_v60  ;;  %v1495_v17 = vsel %vm1463_vm6, inf, %v1427_v61  ;;  %vm1202_vm7 = vmand %vm2675_vm1, %vm1101_vm11  ;;  %v1532_v60 = vsel %vm1515_vm5, %v1430_v46, inf  ;;  %v1307_v61 = vld [vmem:[%s2672_s30 + $0x2a8] sm:$0xff]  ;;  %v1443_v19 = vld [vmem:[%s2672_s30 + $0x3b0] sm:$0xff] }
  0x5d   : > { %v1529_v20 = vsel %vm1515_vm5, %v1495_v17, inf  ;;  %v1234_v21 = vsel %vm1202_vm7, inf, %v1166_v4  ;;  %vm1462_vm9 = vmand %vm2688_vm4, %vm1101_vm11  ;;  %vm1145_vm7 = vcmp.eq.s32.totalorder %v2952_v26, %v2861_v44  ;;  %v1535_v1 = vsel %vm1515_vm5, %v1433_v14, inf  ;;  %v1306_v4 = vld [vmem:[%s2672_s30 + $0x288] sm:$0xff] }
  0x5e   : > { %1667 = vmin.xlane.f32.xlu0 %v1558_v13  ;;  %v1561_v27 = vmin.f32 %v1395_v16, %v1529_v20  ;;  %v1394_v28 = vmin.f32 %v1234_v21, %v1298_v10  ;;  %v1494_v29 = vsel %vm1462_vm9, inf, %v1426_v11  ;;  %vm1205_vm11 = vmand %vm2675_vm1, %vm1104_vm13  ;;  %v1309_v11 = vld [vmem:[%s2672_s30 + $0x2e8] sm:$0xff]  ;;  %v1082_v13 = vadd.s32 216, %v2662_v2  ;;  %v1174_v20 = vld [vmem:[%s2672_s30 + $0x280] sm:$0xff] }
  0x5f   : > { %v1528_v31 = vsel %vm1515_vm5, %v1494_v29, inf  ;;  %v1237_v32 = vsel %vm1205_vm11, inf, %v1169_v15  ;;  %vm1465_vm14 = vmand %vm2688_vm4, %vm1104_vm13  ;;  %v1534_v15 = vsel %vm1515_vm5, %v1432_v53, inf  ;;  %v1537_v29 = vsel %vm1515_vm5, %v1435_v6, inf  ;;  %v1310_v46 = vld [vmem:[%s2672_s30 + $0x308] sm:$0xff]  ;;  %v1715_v6 = vld [vmem:[%s3241_s8 + $0x20] sm:$0xff] }
  0x60   : > { %1673 = vmin.xlane.f32.xlu1 %v1561_v27  ;;  %v1560_v37 = vmin.f32 %v1394_v28, %v1528_v31  ;;  %v1397_v39 = vmin.f32 %v1237_v32, %v1301_v18  ;;  %v1497_v40 = vsel %vm1465_vm14, inf, %v1429_v22  ;;  %vm1204_vm13 = vmand %vm2675_vm1, %vm1103_vm15  ;;  %v1434_v27 = vld [vmem:[%s2672_s30 + $0x290] sm:$0xff]  ;;  %v1308_v28 = vld [vmem:[%s2672_s30 + $0x2c8] sm:$0xff]  ;;  %v1081_v31 = vadd.s32 208, %v2662_v2 }
  0x61   : > { %v1531_v42 = vsel %vm1515_vm5, %v1497_v40, inf  ;;  %v1236_v45 = vsel %vm1204_vm13, inf, %v1168_v23  ;;  %vm1464_vm6 = vmand %vm2688_vm4, %vm1103_vm15  ;;  %vm1146_vm13 = vcmp.eq.s32.totalorder %v3009_v38, %v2861_v44  ;;  %v1439_v38 = vld [vmem:[%s2672_s30 + $0x330] sm:$0xff]  ;;  %v1312_v53 = vld [vmem:[%s2672_s30 + $0x348] sm:$0xff] }
  0x62   : > { %1671 = vmin.xlane.f32.xlu0 %v1560_v37  ;;  %v1563_v49 = vmin.f32 %v1397_v39, %v1531_v42  ;;  %v1396_v50 = vmin.f32 %v1236_v45, %v1300_v24  ;;  %v1496_v51 = vsel %vm1464_vm6, inf, %v1428_v30  ;;  %vm1335_vm4 = vmand %vm2675_vm1, %vm1139_vm2  ;;  %vm1144_vm2 = vcmp.eq.s32.totalorder %v2976_v36, %v2861_v44  ;;  %v1177_v24 = vld [vmem:[%s2672_s30 + $0x2e0] sm:$0xff]  ;;  %v1436_v45 = vld [vmem:[%s2672_s30 + $0x2d0] sm:$0xff] }
  0x63   : > { %v1530_v52 = vsel %vm1515_vm5, %v1496_v51, inf  ;;  %v1367_v54 = vsel %vm1335_vm4, inf, %v1303_v34  ;;  %vm1334_vm15 = vmand %vm2675_vm1, %vm1138_vm8  ;;  %v1437_v34 = vld [vmem:[%s2672_s30 + $0x2f0] sm:$0xff]  ;;  %v1536_v37 = vsel %vm1515_vm5, %v1434_v27, inf  ;;  %v1176_v39 = vld [vmem:[%s2672_s30 + $0x2c0] sm:$0xff]  ;;  %vm1149_vm6 = vcmp.eq.s32.totalorder %v1082_v13, %v2861_v44 }
  0x64   : > { %1677 = vmin.xlane.f32.xlu1 %v1563_v49  ;;  %v1562_v57 = vmin.f32 %v1396_v50, %v1530_v52  ;;  %v1399_v58 = vmin.f32 %v1171_v33, %v1367_v54  ;;  %v1366_v59 = vsel %vm1334_vm15, inf, %v1302_v41  ;;  %vm1337_vm8 = vmand %vm2675_vm1, %vm1141_vm10  ;;  %vm1147_vm10 = vcmp.eq.s32.totalorder %v2999_v48, %v2861_v44  ;;  %v1179_v49 = vld [vmem:[%s2672_s30 + $0x320] sm:$0xff]  ;;  %v1313_v52 = vld [vmem:[%s2672_s30 + $0x368] sm:$0xff] }
  0x65   : > { %v1398_v63 = vmin.f32 %v1170_v25, %v1366_v59  ;;  %v1369_v0 = vsel %vm1337_vm8, inf, %v1305_v3  ;;  %vm1336_vm9 = vmand %vm2675_vm1, %vm1140_vm12  ;;  %v1084_v25 = vadd.s32 232, %v2662_v2  ;;  %v1539_v48 = vsel %vm1515_vm5, %v1437_v34, inf  ;;  %v1180_v13 = vld [vmem:[%s2672_s30 + $0x340] sm:$0xff]  ;;  %v1316_v34 = vld [vmem:[%s2672_s30 + $0x3c8] sm:$0xff] }
  0x66   : > { %1675 = vmin.xlane.f32.xlu0 %v1562_v57  ;;  %v1565_v7 = vmin.f32 %v1399_v58, %v1533_v55  ;;  %v1401_v8 = vmin.f32 %v1173_v47, %v1369_v0  ;;  %v1368_v10 = vsel %vm1336_vm9, inf, %v1304_v56  ;;  %vm1339_vm11 = vmand %vm2675_vm1, %vm1143_vm0  ;;  %vm1148_vm4 = vcmp.eq.s32.totalorder %v1081_v31, %v2861_v44  ;;  %v1181_v0 = vld [vmem:[%s2672_s30 + $0x360] sm:$0xff]  ;;  %v1444_v47 = vld [vmem:[%s2672_s30 + $0x3d0] sm:$0xff] }
  0x67   : > { %v1564_v16 = vmin.f32 %v1398_v63, %v1532_v60  ;;  %v1400_v17 = vmin.f32 %v1172_v43, %v1368_v10  ;;  %v1371_v18 = vsel %vm1339_vm11, inf, %v1307_v61  ;;  %vm3060_vm12 = vmand %vm2675_vm1, %vm1142_vm3  ;;  %v1083_v51 = vadd.s32 224, %v2662_v2  ;;  %v1178_v43 = vld [vmem:[%s2672_s30 + $0x300] sm:$0xff]  ;;  %v1438_v60 = vld [vmem:[%s2672_s30 + $0x310] sm:$0xff] }
  0x68   : > { %1681 = vmin.xlane.f32.xlu1 %v1565_v7  ;;  %v1567_v21 = vmin.f32 %v1401_v8, %v1535_v1  ;;  %v1403_v22 = vmin.f32 %v1175_v62, %v1371_v18  ;;  %v1370_v23 = vsel %vm3060_vm12, inf, %v1306_v4  ;;  %vm3072_vm14 = vmand %vm2675_vm1, %vm1145_vm7  ;;  %v1538_v55 = vsel %vm1515_vm5, %v1436_v45, inf  ;;  %v1441_v8 = vld [vmem:[%s2672_s30 + $0x370] sm:$0xff]  ;;  %v1315_v10 = vld [vmem:[%s2672_s30 + $0x3a8] sm:$0xff] }
  0x69   : > { %v1373_v30 = vsel %vm3072_vm14, inf, %v1309_v11  ;;  %vm3087_vm0 = vmand %vm2675_vm1, %vm1144_vm2  ;;  %v1566_v32 = vmin.f32 %v1400_v17, %v1534_v15  ;;  %v1402_v33 = vmin.f32 %v1174_v20, %v1370_v23  ;;  %vm1151_vm2 = vcmp.eq.s32.totalorder %v1084_v25, %v2861_v44  ;;  %v1440_v15 = vld [vmem:[%s2672_s30 + $0x350] sm:$0xff]  ;;  %v1314_v18 = vld [vmem:[%s2672_s30 + $0x388] sm:$0xff] }
  0x6a   : > { %1679 = vmin.xlane.f32.xlu0 %v1564_v16  ;;  %vm3101_vm3 = vmand %vm2675_vm1, %vm1147_vm10  ;;  %v1372_v40 = vsel %vm3087_vm0, inf, %v1308_v28  ;;  %v1569_v41 = vmin.f32 %v1403_v22, %v1537_v29  ;;  %v1405_v42 = vmin.f32 %v1177_v24, %v1373_v30  ;;  %v1086_v57 = vadd.s32 248, %v2662_v2  ;;  %v1317_v28 = vld [vmem:[%s2672_s30 + $0x3e8] sm:$0xff]  ;;  %v1182_v30 = vld [vmem:[%s2672_s30 + $0x380] sm:$0xff] }
  0x6b   : > { %vm3119_vm7 = vmand %vm2675_vm1, %vm1146_vm13  ;;  %v1375_v50 = vsel %vm3101_vm3, inf, %v1311_v35  ;;  %v1568_v3 = vmin.f32 %v1402_v33, %v1536_v37  ;;  %v1404_v14 = vmin.f32 %v1176_v39, %v1372_v40  ;;  %v1541_v63 = vsel %vm1515_vm5, %v1439_v38, inf  ;;  %v1442_v33 = vld [vmem:[%s2672_s30 + $0x390] sm:$0xff]  ;;  %v1185_v37 = vld [vmem:[%s2672_s30 + $0x3e0] sm:$0xff] }
  0x6c   : > { %1685 = vmin.xlane.f32.xlu1 %v1567_v21  ;;  %vm3136_vm15 = vmand %vm2675_vm1, %vm1149_vm6  ;;  %v1374_v56 = vsel %vm3119_vm7, inf, %v1310_v46  ;;  %v1571_v58 = vmin.f32 %v1405_v42, %v1539_v48  ;;  %v1407_v59 = vmin.f32 %v1179_v49, %v1375_v50  ;;  %vm1150_vm9 = vcmp.eq.s32.totalorder %v1083_v51, %v2861_v44  ;;  %v1183_v21 = vld [vmem:[%s2672_s30 + $0x3a0] sm:$0xff]  ;;  %v1714_v54 = vld [vmem:[%s3241_s8 + $0x18] sm:$0xff] }
  0x6d   : > { %vm3153_vm8 = vmand %vm2675_vm1, %vm1148_vm4  ;;  %v1377_v1 = vsel %vm3136_vm15, inf, %v1313_v52  ;;  %v1085_v62 = vadd.s32 240, %v2662_v2  ;;  %v1570_v4 = vmin.f32 %v1404_v14, %v1538_v55  ;;  %v1406_v7 = vmin.f32 %v1178_v43, %v1374_v56  ;;  %v1184_v42 = vld [vmem:[%s2672_s30 + $0x3c0] sm:$0xff]  ;;  %v1718_v20 = vld [vmem:[%s3241_s8 + $0x38] sm:$0xff] }
  0x6e   : > { %1683 = vmin.xlane.f32.xlu0 %v1566_v32  ;;  %vm3170_vm10 = vmand %vm2675_vm1, %vm1151_vm2  ;;  %v1540_v11 = vsel %vm1515_vm5, %v1438_v60, inf  ;;  %v1376_v2 = vsel %vm3153_vm8, inf, %v1312_v53  ;;  %vm1153_vm11 = vcmp.eq.s32.totalorder %v1086_v57, %v2861_v44  ;;  %v1573_v16 = vmin.f32 %v1407_v59, %v1541_v63  ;;  %v1711_v38 = vld [vmem:[%s3241_s8] sm:$0xff]  ;;  %v1712_v57 = vld [vmem:[%s3241_s8 + $0x8] sm:$0xff] }
  0x6f   : > { %v1409_v17 = vmin.f32 %v1181_v0, %v1377_v1  ;;  %vm3186_vm12 = vmand %vm2675_vm1, %vm1150_vm9  ;;  %v1543_v12 = vsel %vm1515_vm5, %v1441_v8, inf  ;;  %v1379_v22 = vsel %vm3170_vm10, inf, %v1315_v10  ;;  %vm1152_vm14 = vcmp.eq.s32.totalorder %v1085_v62, %v2861_v44  ;;  %v1873_v53 = vld [vmem:[%s3249_s14 + $0x10] sm:$0xff]  ;;  %v1716_v63 = vld [vmem:[%s3241_s8 + $0x28] sm:$0xff] }
  0x70   : > { %1689 = vmin.xlane.f32.xlu1 %v1569_v41  ;;  %v1572_v23 = vmin.f32 %v1406_v7, %v1540_v11  ;;  %v1408_v27 = vmin.f32 %v1180_v13, %v1376_v2  ;;  %vm3202_vm0 = vmand %vm2675_vm1, %vm1153_vm11  ;;  %v1542_v24 = vsel %vm1515_vm5, %v1440_v15, inf  ;;  %v1378_v26 = vsel %vm3186_vm12, inf, %v1314_v18  ;;  %v1445_v41 = vld [vmem:[%s2672_s30 + $0x3f0] sm:$0xff]  ;;  %v1871_v7 = vld [vmem:[%s3249_s14] sm:$0xff] }
  0x71   : > { %v1575_v31 = vmin.f32 %v1409_v17, %v1543_v12  ;;  %v1411_v32 = vmin.f32 %v1183_v21, %v1379_v22  ;;  %vm3217_vm13 = vmand %vm2675_vm1, %vm1152_vm14  ;;  %v1545_v36 = vsel %vm1515_vm5, %v1443_v19, inf  ;;  %v1381_v39 = vsel %vm3202_vm0, inf, %v1317_v28  ;;  %v1874_v17 = vld [vmem:[%s3249_s14 + $0x18] sm:$0xff]  ;;  %v1717_v29 = vld [vmem:[%s3241_s8 + $0x30] sm:$0xff] }
  0x72   : > { %1687 = vmin.xlane.f32.xlu0 %v1568_v3  ;;  %v1574_v40 = vmin.f32 %v1408_v27, %v1542_v24  ;;  %v1410_v25 = vmin.f32 %v1182_v30, %v1378_v26  ;;  %v1544_v44 = vsel %vm1515_vm5, %v1442_v33, inf  ;;  %v1380_v9 = vsel %vm3217_vm13, inf, %v1316_v34  ;;  %v1872_v27 = vld [vmem:[%s3249_s14 + $0x8] sm:$0xff] }
  0x73   : > { %v1577_v45 = vmin.f32 %v1411_v32, %v1545_v36  ;;  %v1413_v46 = vmin.f32 %v1185_v37, %v1381_v39  ;;  %v1547_v48 = vsel %vm1515_vm5, %v1445_v41, inf  ;;  %v1412_v50 = vmin.f32 %v1184_v42, %v1380_v9  ;;  %v1876_v32 = vld [vmem:[%s3249_s14 + $0x28] sm:$0xff]  ;;  %v1719_v42 = vld [vmem:[%s3241_s8 + $0x40] sm:$0xff] }
  0x74   : > { %1693 = vmin.xlane.f32.xlu1 %v1571_v58  ;;  %v1576_v49 = vmin.f32 %v1410_v25, %v1544_v44  ;;  %v1546_v51 = vsel %vm1515_vm5, %v1444_v47, inf  ;;  %v1745_v52 = vadd.f32 100000.0, %v1713_v5  ;;  %v1809_v55 = vmax.f32 %v1713_v5, 0.0  ;;  %v1720_v35 = vld [vmem:[%s3241_s8 + $0x48] sm:$0xff]  ;;  %v1875_v25 = vld [vmem:[%s3249_s14 + $0x20] sm:$0xff] }
  0x75   : > { %v1579_v3 = vmin.f32 %v1413_v46, %v1547_v48  ;;  %v1578_v14 = vmin.f32 %v1412_v50, %v1546_v51  ;;  %v1743_v43 = vadd.f32 100000.0, %v1711_v38  ;;  %v1807_v59 = vmax.f32 %v1711_v38, 0.0  ;;  %v1878_v48 = vld [vmem:[%s3249_s14 + $0x38] sm:$0xff] }
  0x76   : > { %1691 = vmin.xlane.f32.xlu0 %v1570_v4  ;;  %v1746_v60 = vadd.f32 100000.0, %v1714_v54  ;;  %v1810_v62 = vmax.f32 %v1714_v54, 0.0  ;;  %v1744_v4 = vadd.f32 100000.0, %v1712_v57  ;;  %vm1935_vm1 = vcmask 7168   ;;  %v1722_v51 = vld [vmem:[%s3241_s8 + $0x58] sm:$0xff] }
  0x77   : > { %v1808_v10 = vmax.f32 %v1712_v57, 0.0  ;;  %v1812_v18 = vmax.f32 %v1716_v63, 0.0  ;;  %v1811_v28 = vmax.f32 %v1715_v6, 0.0  ;;  %v1814_v34 = vmax.f32 %v1718_v20, 0.0 }
  0x78   : > { %1697 = vmin.xlane.f32.xlu1 %v1573_v16  ;;  %v1748_v16 = vadd.f32 100000.0, %v1716_v63  ;;  %v1813_v44 = vmax.f32 %v1717_v29, 0.0  ;;  %v1752_v47 = vadd.f32 100000.0, %v1720_v35  ;;  %v1816_v50 = vmax.f32 %v1720_v35, 0.0  ;;  %v1724_v63 = vld [vmem:[%s3241_s8 + $0x68] sm:$0xff] }
  0x79   : > { %v1751_v38 = vadd.f32 100000.0, %v1719_v42  ;;  %v1728_v35 = vld [vmem:[%s3241_s8 + $0x88] sm:$0xff] }
  0x7a   : > { %1695 = vmin.xlane.f32.xlu0 %v1572_v23  ;;  %v1747_v23 = vadd.f32 100000.0, %v1715_v6  ;;  %v1723_v6 = vld [vmem:[%s3241_s8 + $0x60] sm:$0xff] }
  0x7c   : > { %1701 = vmin.xlane.f32.xlu1 %v1575_v31  ;;  %v1750_v31 = vadd.f32 100000.0, %v1718_v20  ;;  %v1726_v20 = vld [vmem:[%s3241_s8 + $0x78] sm:$0xff] }
  0x7e   : > { %1699 = vmin.xlane.f32.xlu0 %v1574_v40  ;;  %v1749_v40 = vadd.f32 100000.0, %v1717_v29  ;;  %v1725_v29 = vld [vmem:[%s3241_s8 + $0x70] sm:$0xff] }
  0x80   : > { %1705 = vmin.xlane.f32.xlu1 %v1577_v45 }
  0x82   : > { %1703 = vmin.xlane.f32.xlu0 %v1576_v49 }
  0x84   : > { %1709 = vmin.xlane.f32.xlu1 %v1579_v3 }
  0x86   : > { %1707 = vmin.xlane.f32.xlu0 %v1578_v14 }
  0xd5   : > { %v1652_v56 = vpop.xlane.xlu1 %1651 }
  0xd6   : > { %v1777_v58 = vmin.f32 %v1652_v56, %v1745_v52  ;;  %v1877_v52 = vld [vmem:[%s3249_s14 + $0x30] sm:$0xff] }
  0xd7   : > { %v1648_v61 = vpop.xlane.xlu0 %1647 }
  0xd8   : > { %v1841_v0 = vsub.f32 %v1809_v55, %v1777_v58  ;;  %v1775_v1 = vmin.f32 %v1648_v61, %v1743_v43  ;;  %v1815_v55 = vmax.f32 %v1719_v42, 0.0  ;;  %v1721_v43 = vld [vmem:[%s3241_s8 + $0x50] sm:$0xff]  ;;  %v1818_v61 = vmax.f32 %v1722_v51, 0.0 }
  0xd9   : > { %v1654_v8 = vpop.xlane.xlu1 %1653  ;;  %v1821_v42 = vmax.f32 %v1725_v29, 0.0 }
  0xda   : > { %v1905_v11 = vmul.f32 %v1873_v53, %v1841_v0  ;;  %v1839_v13 = vsub.f32 %v1807_v59, %v1775_v1  ;;  %v1778_v2 = vmin.f32 %v1654_v8, %v1746_v60  ;;  %v1754_v59 = vadd.f32 100000.0, %v1722_v51  ;;  %v1880_v60 = vld [vmem:[%s3249_s14 + $0x48] sm:$0xff]  ;;  %v1730_v51 = vld [vmem:[%s3241_s8 + $0x98] sm:$0xff] }
  0xdb   : > { %v1650_v15 = vpop.xlane.xlu0 %1649 }
  0xdc   : > { %1938 = vst.msk [vmem:[%s3257_s22 + $0x10] sm:$0xff] %vm1935_vm1, %v1905_v11  ;;  %v1903_v12 = vmul.f32 %v1871_v7, %v1839_v13  ;;  %v1842_v21 = vsub.f32 %v1810_v62, %v1778_v2  ;;  %v1776_v22 = vmin.f32 %v1650_v15, %v1744_v4  ;;  %v1753_v4 = vadd.f32 100000.0, %v1721_v43  ;;  %v1879_v7 = vld [vmem:[%s3249_s14 + $0x40] sm:$0xff] }
  0xdd   : > { %v1658_v19 = vpop.xlane.xlu1 %1657 }
  0xde   : > { %1936 = vst.msk [vmem:[%s3257_s22] sm:$0xff] %vm1935_vm1, %v1903_v12  ;;  %v1906_v24 = vmul.f32 %v1874_v17, %v1842_v21  ;;  %v1840_v30 = vsub.f32 %v1808_v10, %v1776_v22  ;;  %v1780_v26 = vmin.f32 %v1658_v19, %v1748_v16  ;;  %v1817_v10 = vmax.f32 %v1721_v43, 0.0  ;;  %v1882_v17 = vld [vmem:[%s3249_s14 + $0x58] sm:$0xff] }
  0xdf   : > { %v1656_v33 = vpop.xlane.xlu0 %1655  ;;  %v1756_v16 = vadd.f32 100000.0, %v1724_v63 }
  0xe0   : > { %1939 = vst.msk [vmem:[%s3257_s22 + $0x18] sm:$0xff] %vm1935_vm1, %v1906_v24  ;;  %v1904_v36 = vmul.f32 %v1872_v27, %v1840_v30  ;;  %v1844_v37 = vsub.f32 %v1812_v18, %v1780_v26  ;;  %v1779_v39 = vmin.f32 %v1656_v33, %v1747_v23  ;;  %v1820_v18 = vmax.f32 %v1724_v63, 0.0  ;;  %v1881_v27 = vld [vmem:[%s3249_s14 + $0x50] sm:$0xff]  ;;  %v1732_v63 = vld [vmem:[%s3241_s8 + $0xa8] sm:$0xff] }
  0xe1   : > { %v1662_v41 = vpop.xlane.xlu1 %1661  ;;  %v1755_v23 = vadd.f32 100000.0, %v1723_v6 }
  0xe2   : > { %1937 = vst.msk [vmem:[%s3257_s22 + $0x8] sm:$0xff] %vm1935_vm1, %v1904_v36  ;;  %v1908_v9 = vmul.f32 %v1876_v32, %v1844_v37  ;;  %v1843_v45 = vsub.f32 %v1811_v28, %v1779_v39  ;;  %v1782_v46 = vmin.f32 %v1662_v41, %v1750_v31  ;;  %v1819_v28 = vmax.f32 %v1723_v6, 0.0  ;;  %v1884_v32 = vld [vmem:[%s3249_s14 + $0x68] sm:$0xff]  ;;  %v1883_v41 = vld [vmem:[%s3249_s14 + $0x60] sm:$0xff] }
  0xe3   : > { %v1660_v49 = vpop.xlane.xlu0 %1659  ;;  %v1758_v31 = vadd.f32 100000.0, %v1726_v20 }
  0xe4   : > { %1941 = vst.msk [vmem:[%s3257_s22 + $0x28] sm:$0xff] %vm1935_vm1, %v1908_v9  ;;  %v1907_v3 = vmul.f32 %v1875_v25, %v1843_v45  ;;  %v1846_v14 = vsub.f32 %v1814_v34, %v1782_v46  ;;  %v1781_v5 = vmin.f32 %v1660_v49, %v1749_v40  ;;  %v1822_v34 = vmax.f32 %v1726_v20, 0.0  ;;  %v1727_v25 = vld [vmem:[%s3241_s8 + $0x80] sm:$0xff]  ;;  %v1734_v20 = vld [vmem:[%s3241_s8 + $0xb8] sm:$0xff] }
  0xe5   : > { %v1666_v54 = vpop.xlane.xlu1 %1665  ;;  %v1757_v40 = vadd.f32 100000.0, %v1725_v29  ;;  %v1823_v43 = vmax.f32 %v1727_v25, 0.0 }
  0xe6   : > { %1940 = vst.msk [vmem:[%s3257_s22 + $0x20] sm:$0xff] %vm1935_vm1, %v1907_v3  ;;  %v1910_v56 = vmul.f32 %v1878_v48, %v1846_v14  ;;  %v1845_v57 = vsub.f32 %v1813_v44, %v1781_v5  ;;  %v1784_v58 = vmin.f32 %v1666_v54, %v1752_v47  ;;  %v1760_v47 = vadd.f32 100000.0, %v1728_v35  ;;  %v1886_v48 = vld [vmem:[%s3249_s14 + $0x78] sm:$0xff]  ;;  %v1885_v54 = vld [vmem:[%s3249_s14 + $0x70] sm:$0xff] }
  0xe7   : > { %v1664_v53 = vpop.xlane.xlu0 %1663 }
  0xe8   : > { %1943 = vst.msk [vmem:[%s3257_s22 + $0x38] sm:$0xff] %vm1935_vm1, %v1910_v56  ;;  %v1909_v0 = vmul.f32 %v1877_v52, %v1845_v57  ;;  %v1848_v1 = vsub.f32 %v1816_v50, %v1784_v58  ;;  %v1783_v62 = vmin.f32 %v1664_v53, %v1751_v38  ;;  %v1759_v50 = vadd.f32 100000.0, %v1727_v25  ;;  %v1729_v52 = vld [vmem:[%s3241_s8 + $0x90] sm:$0xff]  ;;  %v1735_v25 = vld [vmem:[%s3241_s8 + $0xc0] sm:$0xff] }
  0xe9   : > { %v1670_v8 = vpop.xlane.xlu1 %1669  ;;  %v1824_v38 = vmax.f32 %v1728_v35, 0.0  ;;  %v1825_v6 = vmax.f32 %v1729_v52, 0.0  ;;  %v1736_v35 = vld [vmem:[%s3241_s8 + $0xc8] sm:$0xff] }
  0xea   : > { %1942 = vst.msk [vmem:[%s3257_s22 + $0x30] sm:$0xff] %vm1935_vm1, %v1909_v0  ;;  %v1912_v11 = vmul.f32 %v1880_v60, %v1848_v1  ;;  %v1847_v13 = vsub.f32 %v1815_v55, %v1783_v62  ;;  %v1786_v2 = vmin.f32 %v1670_v8, %v1754_v59  ;;  %v1762_v59 = vadd.f32 100000.0, %v1730_v51  ;;  %v1888_v60 = vld [vmem:[%s3249_s14 + $0x88] sm:$0xff]  ;;  %v1887_v8 = vld [vmem:[%s3249_s14 + $0x80] sm:$0xff] }
  0xeb   : > { %v1668_v15 = vpop.xlane.xlu0 %1667 }
  0xec   : > { %1945 = vst.msk [vmem:[%s3257_s22 + $0x48] sm:$0xff] %vm1935_vm1, %v1912_v11  ;;  %v1911_v12 = vmul.f32 %v1879_v7, %v1847_v13  ;;  %v1850_v21 = vsub.f32 %v1818_v61, %v1786_v2  ;;  %v1785_v22 = vmin.f32 %v1668_v15, %v1753_v4  ;;  %v1761_v61 = vadd.f32 100000.0, %v1729_v52  ;;  %v1731_v7 = vld [vmem:[%s3241_s8 + $0xa0] sm:$0xff]  ;;  %v1737_v52 = vld [vmem:[%s3241_s8 + $0xd0] sm:$0xff] }
  0xed   : > { %v1674_v19 = vpop.xlane.xlu1 %1673  ;;  %v1826_v4 = vmax.f32 %v1730_v51, 0.0  ;;  %v1827_v29 = vmax.f32 %v1731_v7, 0.0  ;;  %v1738_v51 = vld [vmem:[%s3241_s8 + $0xd8] sm:$0xff] }
  0xee   : > { %1944 = vst.msk [vmem:[%s3257_s22 + $0x40] sm:$0xff] %vm1935_vm1, %v1911_v12  ;;  %v1914_v24 = vmul.f32 %v1882_v17, %v1850_v21  ;;  %v1849_v30 = vsub.f32 %v1817_v10, %v1785_v22  ;;  %v1788_v26 = vmin.f32 %v1674_v19, %v1756_v16  ;;  %v1764_v16 = vadd.f32 100000.0, %v1732_v63  ;;  %v1890_v17 = vld [vmem:[%s3249_s14 + $0x98] sm:$0xff]  ;;  %v1889_v19 = vld [vmem:[%s3249_s14 + $0x90] sm:$0xff] }
  0xef   : > { %v1672_v33 = vpop.xlane.xlu0 %1671 }
  0xf0   : > { %1947 = vst.msk [vmem:[%s3257_s22 + $0x58] sm:$0xff] %vm1935_vm1, %v1914_v24  ;;  %v1913_v36 = vmul.f32 %v1881_v27, %v1849_v30  ;;  %v1852_v37 = vsub.f32 %v1820_v18, %v1788_v26  ;;  %v1787_v39 = vmin.f32 %v1672_v33, %v1755_v23  ;;  %v1763_v18 = vadd.f32 100000.0, %v1731_v7  ;;  %v1733_v27 = vld [vmem:[%s3241_s8 + $0xb0] sm:$0xff]  ;;  %v1739_v7 = vld [vmem:[%s3241_s8 + $0xe0] sm:$0xff] }
  0xf1   : > { %v1678_v44 = vpop.xlane.xlu1 %1677  ;;  %v1828_v23 = vmax.f32 %v1732_v63, 0.0  ;;  %v1740_v63 = vld [vmem:[%s3241_s8 + $0xe8] sm:$0xff] }
  0xf2   : > { %1946 = vst.msk [vmem:[%s3257_s22 + $0x50] sm:$0xff] %vm1935_vm1, %v1913_v36  ;;  %v1916_v9 = vmul.f32 %v1884_v32, %v1852_v37  ;;  %v1851_v45 = vsub.f32 %v1819_v28, %v1787_v39  ;;  %v1790_v46 = vmin.f32 %v1678_v44, %v1758_v31  ;;  %v1766_v31 = vadd.f32 100000.0, %v1734_v20  ;;  %v1892_v32 = vld [vmem:[%s3249_s14 + $0xa8] sm:$0xff] }
  0xf3   : > { %v1676_v49 = vpop.xlane.xlu0 %1675 }
  0xf4   : > { %1949 = vst.msk [vmem:[%s3257_s22 + $0x68] sm:$0xff] %vm1935_vm1, %v1916_v9  ;;  %v1915_v3 = vmul.f32 %v1883_v41, %v1851_v45  ;;  %v1854_v14 = vsub.f32 %v1822_v34, %v1790_v46  ;;  %v1789_v5 = vmin.f32 %v1676_v49, %v1757_v40  ;;  %v1765_v34 = vadd.f32 100000.0, %v1733_v27  ;;  %v1891_v41 = vld [vmem:[%s3249_s14 + $0xa0] sm:$0xff] }
  0xf5   : > { %v1682_v55 = vpop.xlane.xlu1 %1681  ;;  %v1830_v40 = vmax.f32 %v1734_v20, 0.0  ;;  %v1742_v20 = vld [vmem:[%s3241_s8 + $0xf8] sm:$0xff] }
  0xf6   : > { %1948 = vst.msk [vmem:[%s3257_s22 + $0x60] sm:$0xff] %vm1935_vm1, %v1915_v3  ;;  %v1918_v56 = vmul.f32 %v1886_v48, %v1854_v14  ;;  %v1853_v57 = vsub.f32 %v1821_v42, %v1789_v5  ;;  %v1792_v58 = vmin.f32 %v1682_v55, %v1760_v47  ;;  %v1829_v42 = vmax.f32 %v1733_v27, 0.0  ;;  %v1894_v48 = vld [vmem:[%s3249_s14 + $0xb8] sm:$0xff]  ;;  %v1741_v27 = vld [vmem:[%s3241_s8 + $0xf0] sm:$0xff] }
  0xf7   : > { %v1680_v53 = vpop.xlane.xlu0 %1679  ;;  %v1768_v47 = vadd.f32 100000.0, %v1736_v35 }
  0xf8   : > { %1951 = vst.msk [vmem:[%s3257_s22 + $0x78] sm:$0xff] %vm1935_vm1, %v1918_v56  ;;  %v1917_v0 = vmul.f32 %v1885_v54, %v1853_v57  ;;  %v1856_v1 = vsub.f32 %v1824_v38, %v1792_v58  ;;  %v1791_v62 = vmin.f32 %v1680_v53, %v1759_v50  ;;  %v1767_v50 = vadd.f32 100000.0, %v1735_v25  ;;  %v1893_v54 = vld [vmem:[%s3249_s14 + $0xb0] sm:$0xff] }
  0xf9   : > { %v1686_v10 = vpop.xlane.xlu1 %1685  ;;  %v1832_v38 = vmax.f32 %v1736_v35, 0.0 }
  0xfa   : > { %1950 = vst.msk [vmem:[%s3257_s22 + $0x70] sm:$0xff] %vm1935_vm1, %v1917_v0  ;;  %v1920_v11 = vmul.f32 %v1888_v60, %v1856_v1  ;;  %v1855_v13 = vsub.f32 %v1823_v43, %v1791_v62  ;;  %v1794_v2 = vmin.f32 %v1686_v10, %v1762_v59  ;;  %v1831_v43 = vmax.f32 %v1735_v25, 0.0  ;;  %v1896_v60 = vld [vmem:[%s3249_s14 + $0xc8] sm:$0xff] }
  0xfb   : > { %v1684_v15 = vpop.xlane.xlu0 %1683  ;;  %v1770_v59 = vadd.f32 100000.0, %v1738_v51 }
  0xfc   : > { %1953 = vst.msk [vmem:[%s3257_s22 + $0x88] sm:$0xff] %vm1935_vm1, %v1920_v11  ;;  %v1919_v12 = vmul.f32 %v1887_v8, %v1855_v13  ;;  %v1858_v21 = vsub.f32 %v1826_v4, %v1794_v2  ;;  %v1793_v22 = vmin.f32 %v1684_v15, %v1761_v61  ;;  %v1769_v61 = vadd.f32 100000.0, %v1737_v52  ;;  %v1895_v8 = vld [vmem:[%s3249_s14 + $0xc0] sm:$0xff] }
  0xfd   : > { %v1690_v28 = vpop.xlane.xlu1 %1689  ;;  %v1834_v4 = vmax.f32 %v1738_v51, 0.0 }
  0xfe   : > { %1952 = vst.msk [vmem:[%s3257_s22 + $0x80] sm:$0xff] %vm1935_vm1, %v1919_v12  ;;  %v1922_v24 = vmul.f32 %v1890_v17, %v1858_v21  ;;  %v1857_v30 = vsub.f32 %v1825_v6, %v1793_v22  ;;  %v1796_v26 = vmin.f32 %v1690_v28, %v1764_v16  ;;  %v1833_v6 = vmax.f32 %v1737_v52, 0.0  ;;  %v1898_v17 = vld [vmem:[%s3249_s14 + $0xd8] sm:$0xff] }
  0xff   : > { %v1688_v33 = vpop.xlane.xlu0 %1687  ;;  %v1772_v16 = vadd.f32 100000.0, %v1740_v63 }
 0x100   : > { %1955 = vst.msk [vmem:[%s3257_s22 + $0x98] sm:$0xff] %vm1935_vm1, %v1922_v24  ;;  %v1921_v36 = vmul.f32 %v1889_v19, %v1857_v30  ;;  %v1860_v37 = vsub.f32 %v1828_v23, %v1796_v26  ;;  %v1795_v39 = vmin.f32 %v1688_v33, %v1763_v18  ;;  %v1771_v18 = vadd.f32 100000.0, %v1739_v7  ;;  %v1897_v19 = vld [vmem:[%s3249_s14 + $0xd0] sm:$0xff] }
 0x101   : > { %v1694_v44 = vpop.xlane.xlu1 %1693  ;;  %v1836_v23 = vmax.f32 %v1740_v63, 0.0 }
 0x102   : > { %1954 = vst.msk [vmem:[%s3257_s22 + $0x90] sm:$0xff] %vm1935_vm1, %v1921_v36  ;;  %v1924_v9 = vmul.f32 %v1892_v32, %v1860_v37  ;;  %v1859_v45 = vsub.f32 %v1827_v29, %v1795_v39  ;;  %v1798_v46 = vmin.f32 %v1694_v44, %v1766_v31  ;;  %v1835_v29 = vmax.f32 %v1739_v7, 0.0  ;;  %v1900_v32 = vld [vmem:[%s3249_s14 + $0xe8] sm:$0xff] }
 0x103   : > { %v1692_v49 = vpop.xlane.xlu0 %1691  ;;  %v1774_v31 = vadd.f32 100000.0, %v1742_v20  ;;  %v1838_v39 = vmax.f32 %v1742_v20, 0.0 }
 0x104   : > { %1957 = vst.msk [vmem:[%s3257_s22 + $0xa8] sm:$0xff] %vm1935_vm1, %v1924_v9  ;;  %v1923_v3 = vmul.f32 %v1891_v41, %v1859_v45  ;;  %v1862_v14 = vsub.f32 %v1830_v40, %v1798_v46  ;;  %v1797_v5 = vmin.f32 %v1692_v49, %v1765_v34  ;;  %v1773_v34 = vadd.f32 100000.0, %v1741_v27  ;;  %v1899_v40 = vld [vmem:[%s3249_s14 + $0xe0] sm:$0xff]  ;;  %v1902_v45 = vld [vmem:[%s3249_s14 + $0xf8] sm:$0xff] }
 0x105   : > { %v1698_v55 = vpop.xlane.xlu1 %1697  ;;  %v1837_v9 = vmax.f32 %v1741_v27, 0.0 }
 0x106   : > { %1956 = vst.msk [vmem:[%s3257_s22 + $0xa0] sm:$0xff] %vm1935_vm1, %v1923_v3  ;;  %v1926_v56 = vmul.f32 %v1894_v48, %v1862_v14  ;;  %v1861_v57 = vsub.f32 %v1829_v42, %v1797_v5  ;;  %v1800_v58 = vmin.f32 %v1698_v55, %v1768_v47 }
 0x107   : > { %v1696_v53 = vpop.xlane.xlu0 %1695 }
 0x108   : > { %1959 = vst.msk [vmem:[%s3257_s22 + $0xb8] sm:$0xff] %vm1935_vm1, %v1926_v56  ;;  %v1925_v0 = vmul.f32 %v1893_v54, %v1861_v57  ;;  %v1864_v1 = vsub.f32 %v1832_v38, %v1800_v58  ;;  %v1799_v62 = vmin.f32 %v1696_v53, %v1767_v50  ;;  %v1901_v50 = vld [vmem:[%s3249_s14 + $0xf0] sm:$0xff] }
 0x109   : > { %v1702_v10 = vpop.xlane.xlu1 %1701 }
 0x10a   : > { %1958 = vst.msk [vmem:[%s3257_s22 + $0xb0] sm:$0xff] %vm1935_vm1, %v1925_v0  ;;  %v1928_v11 = vmul.f32 %v1896_v60, %v1864_v1  ;;  %v1863_v13 = vsub.f32 %v1831_v43, %v1799_v62  ;;  %v1802_v2 = vmin.f32 %v1702_v10, %v1770_v59 }
 0x10b   : > { %v1700_v15 = vpop.xlane.xlu0 %1699 }
 0x10c   : > { %1961 = vst.msk [vmem:[%s3257_s22 + $0xc8] sm:$0xff] %vm1935_vm1, %v1928_v11  ;;  %v1927_v12 = vmul.f32 %v1895_v8, %v1863_v13  ;;  %v1866_v21 = vsub.f32 %v1834_v4, %v1802_v2  ;;  %v1801_v22 = vmin.f32 %v1700_v15, %v1769_v61 }
 0x10d   : > { %v1706_v28 = vpop.xlane.xlu1 %1705 }
 0x10e   : > { %1960 = vst.msk [vmem:[%s3257_s22 + $0xc0] sm:$0xff] %vm1935_vm1, %v1927_v12  ;;  %v1930_v24 = vmul.f32 %v1898_v17, %v1866_v21  ;;  %v1865_v30 = vsub.f32 %v1833_v6, %v1801_v22  ;;  %v1804_v26 = vmin.f32 %v1706_v28, %v1772_v16 }
 0x10f   : > { %v1704_v33 = vpop.xlane.xlu0 %1703 }
 0x110   : > { %1963 = vst.msk [vmem:[%s3257_s22 + $0xd8] sm:$0xff] %vm1935_vm1, %v1930_v24  ;;  %v1929_v35 = vmul.f32 %v1897_v19, %v1865_v30  ;;  %v1868_v36 = vsub.f32 %v1836_v23, %v1804_v26  ;;  %v1803_v37 = vmin.f32 %v1704_v33, %v1771_v18 }
 0x111   : > { %v1710_v25 = vpop.xlane.xlu1 %1709 }
 0x112   : > { %1962 = vst.msk [vmem:[%s3257_s22 + $0xd0] sm:$0xff] %vm1935_vm1, %v1929_v35  ;;  %v1932_v41 = vmul.f32 %v1900_v32, %v1868_v36  ;;  %v1867_v44 = vsub.f32 %v1835_v29, %v1803_v37  ;;  %v1806_v42 = vmin.f32 %v1710_v25, %v1774_v31 }
 0x113   : > { %v1708_v46 = vpop.xlane.xlu0 %1707 }
 0x114   : > { %1965 = vst.msk [vmem:[%s3257_s22 + $0xe8] sm:$0xff] %vm1935_vm1, %v1932_v41  ;;  %v1931_v47 = vmul.f32 %v1899_v40, %v1867_v44  ;;  %v1870_v48 = vsub.f32 %v1838_v39, %v1806_v42  ;;  %v1805_v49 = vmin.f32 %v1708_v46, %v1773_v34 }
 0x116   : > { %1964 = vst.msk [vmem:[%s3257_s22 + $0xe0] sm:$0xff] %vm1935_vm1, %v1931_v47  ;;  %v1934_v51 = vmul.f32 %v1902_v45, %v1870_v48  ;;  %v1869_v3 = vsub.f32 %v1837_v9, %v1805_v49 }
 0x118   : > { %1967 = vst.msk [vmem:[%s3257_s22 + $0xf8] sm:$0xff] %vm1935_vm1, %v1934_v51  ;;  %v1933_v14 = vmul.f32 %v1901_v50, %v1869_v3 }
 0x11a   : > { %1966 = vst.msk [vmem:[%s3257_s22 + $0xf0] sm:$0xff] %vm1935_vm1, %v1933_v14 }
 0x11b PF: > { %s13_s16 = sadd.s32 1, %s2527_s16   ;;  %s3430_s12 = smov %s2515_s13 }
 0x11c   : > { %p10_p5 = scmp.ge.s32.totalorder %s13_s16, 4   ;;  %s3431_s13 = smov %s2604_s20 }
 0x11d   : > { %s3432_s14 = smov %s2523_s15  ;;  %s3433_s15 = smov %s3435_s17 }
 0x11e   :  { %12 = sbr.rel (!%p10_p5) target bundleno = 3 (0x3), region = 315 }

</bundles_post_ra>
